<compile_context>
chip_gen: v6e
topology: v6e:2x2x1
jax: 0.10.0
libtpu: 0.0.40
codegen_flags: <defaults>
</compile_context>

<pallas_src>
import jax
import jax.numpy as jnp
from jax.experimental import pallas as pl
from jax.experimental.pallas import tpu as pltpu


def _round_up(a, b):
    return -(-a // b) * b


# ----------------------------------------------------------------------------
# Kernels
# ----------------------------------------------------------------------------
def _linear_kernel_direct(x_ref, w_ref, b_ref, o_ref):
    """f32 output: accumulate straight into the resident output tile."""
    # x_ref: (tm, tk) bf16   w_ref: (tk, tn) bf16   b_ref: (1, tn) f32
    # o_ref: (tm, tn) f32  (resident across the K grid axis)
    k = pl.program_id(2)

    @pl.when(k == 0)
    def _():
        o_ref[...] = jnp.broadcast_to(b_ref[...], o_ref.shape)

    o_ref[...] += jnp.dot(x_ref[...], w_ref[...],
                          preferred_element_type=jnp.float32)


def _linear_kernel_acc(x_ref, w_ref, b_ref, o_ref, acc_ref):
    """Non-f32 output: f32 VMEM accumulator + cast on the last K step."""
    k = pl.program_id(2)

    @pl.when(k == 0)
    def _():
        acc_ref[...] = jnp.broadcast_to(b_ref[...], acc_ref.shape)

    acc_ref[...] += jnp.dot(x_ref[...], w_ref[...],
                            preferred_element_type=jnp.float32)

    @pl.when(k == pl.num_programs(2) - 1)
    def _():
        o_ref[...] = acc_ref[...].astype(o_ref.dtype)


# ----------------------------------------------------------------------------
# Wrapper
# ----------------------------------------------------------------------------
def choose_tiles(B, D, C, *, tm=512, tn=512, tk=1024):
    """Tile sizes: big defaults (clear the HBM ridge), min-capped for small
    shapes, whole-batch M block when the batch fits."""
    if B <= 2048:
        # Whole batch as one M block -> each weight tile is read from HBM once.
        tm = _round_up(B, 16) if B <= 256 else _round_up(B, 256)
    else:
        tm = min(tm, _round_up(B, 256))
    tn = min(tn, _round_up(C, 128))
    tk = min(tk, _round_up(D, 128))
    return tm, tn, tk


def prepare_classifier_params(weight, bias, *, tn, tk):
    """One-time, init-path parameter prep (do NOT call per forward).

    weight: (C, D) f32 (PyTorch layout) -> (Dp, Cp) bf16, padded & transposed
    bias:   (C,)   f32                  -> (1, Cp)  f32, padded
    """
    C, D = weight.shape
    Cp, Dp = _round_up(C, tn), _round_up(D, tk)
    w = weight
    if (Cp, Dp) != (C, D):
        w = jnp.pad(w, ((0, Cp - C), (0, Dp - D)))
    w_t = jnp.transpose(w).astype(jnp.bfloat16)            # (Dp, Cp) bf16
    b = bias if Cp == C else jnp.pad(bias, (0, Cp - C))
    b_row = b.astype(jnp.float32).reshape(1, Cp)
    return w_t, b_row


def classifier_forward(x, w_t, b_row, num_classes, *, tm, tn, tk,
                       core_parallel=False, weight_buffers=2):
    """y = x @ weight.T + bias, with weight pre-prepared as (Dp, Cp) bf16.

    x:     (B, D) float32
    w_t:   (Dp, Cp) bfloat16   from prepare_classifier_params
    b_row: (1, Cp)  float32    from prepare_classifier_params
    returns (B, num_classes) in x.dtype
    """
    B, D = x.shape
    Dp, Cp = w_t.shape
    assert Dp % tk == 0 and Cp % tn == 0 and Dp >= D and Cp >= num_classes
    out_dtype = x.dtype

    Mp = _round_up(B, tm)
    xp = x
    if (Mp, Dp) != (B, D):
        # Zero padding: padded D columns contribute 0, padded rows sliced off.
        xp = jnp.pad(x, ((0, Mp - B), (0, Dp - D)))
    xp = xp.astype(jnp.bfloat16)

    grid = (Mp // tm, Cp // tn, Dp // tk)

    # Optional deeper weight pipeline (sweep 2 vs 3 once tiles are large).
    w_spec_kwargs = {}
    if weight_buffers > 2:
        w_spec_kwargs["pipeline_mode"] = pl.Buffered(weight_buffers)

    in_specs = [
        pl.BlockSpec((tm, tk), lambda i, j, k: (i, k)),                     # x
        pl.BlockSpec((tk, tn), lambda i, j, k: (k, j), **w_spec_kwargs),    # w_t
        pl.BlockSpec((1, tn), lambda i, j, k: (0, j)),                      # bias
    ]
    out_spec = pl.BlockSpec((tm, tn), lambda i, j, k: (i, j))

    if out_dtype == jnp.float32:
        kernel = _linear_kernel_direct
        scratch_shapes = []
    else:
        kernel = _linear_kernel_acc
        scratch_shapes = [pltpu.VMEM((tm, tn), jnp.float32)]

    # M/N independent, K is the reduction (output tile resident across K).
    # On v7x, pass core_parallel=True to shard the M axis across the 2 TCs.
    m_sem = pltpu.CORE_PARALLEL if core_parallel else "parallel"
    dim_sem = (m_sem, "parallel", "arbitrary")

    out_p = pl.pallas_call(
        kernel,
        out_shape=jax.ShapeDtypeStruct((Mp, Cp), out_dtype),
        grid_spec=pltpu.PrefetchScalarGridSpec(
            num_scalar_prefetch=0,
            grid=grid,
            in_specs=in_specs,
            out_specs=out_spec,
            scratch_shapes=scratch_shapes,
        ),
        compiler_params=pltpu.CompilerParams(
            dimension_semantics=dim_sem,
            # 48 MiB: legal on v5e (default scoped 16 MiB), safe within v7x's
            # 64 MiB per-TC VMEM; default tiles need < 8 MiB double-buffered.
            vmem_limit_bytes=48 * 1024 * 1024,
        ),
    )(xp, w_t, b_row)

    return out_p[:B, :num_classes]


if __name__ == "__main__":
    # Small shapes consistent with the module: batch=8, input_dim=32, classes=16
    B, D, C = 8, 32, 16

    key = jax.random.PRNGKey(0)
    kx, kw, kb = jax.random.split(key, 3)

    x = jax.random.normal(kx, (B, D), dtype=jnp.float32)
    bound = 1.0 / (D ** 0.5)
    weight = jax.random.uniform(kw, (C, D), minval=-bound, maxval=bound,
                                dtype=jnp.float32)
    bias = jax.random.uniform(kb, (C,), minval=-bound, maxval=bound,
                              dtype=jnp.float32)

    # Init-time prep (once per model, not per forward call).
    tm, tn, tk = choose_tiles(B, D, C)
    w_t, b_row = prepare_classifier_params(weight, bias, tn=tn, tk=tk)

    y = classifier_forward(x, w_t, b_row, C, tm=tm, tn=tn, tk=tk)
    jax.block_until_ready(y)

    # Reference in matching precision (bf16 operands, f32 accumulation + bias).
    # TODO(synk): callers expecting f32-exact nn.Linear numerics should keep
    # the weight in f32; here it is bf16 by design (halves weight HBM traffic).
    xb = x.astype(jnp.bfloat16).astype(jnp.float32)
    wb = weight.astype(jnp.bfloat16).astype(jnp.float32)
    y_ref = xb @ wb.T + bias

    assert y.shape == (B, C)
    assert jnp.allclose(y, y_ref, atol=1e-3, rtol=1e-3), \
        float(jnp.max(jnp.abs(y - y_ref)))

    print("KERNEL_OK")
</pallas_src>

<mosaic_0001>
module attributes {stable_mosaic.version = 11 : i64} {
  func.func @_linear_kernel_direct(%arg0: i32, %arg1: i32, %arg2: i32, %arg3: memref<16x128xbf16, #tpu.memory_space<vmem>>, %arg4: memref<128x128xbf16, #tpu.memory_space<vmem>>, %arg5: memref<1x128xf32, #tpu.memory_space<vmem>>, %arg6: memref<16x128xf32, #tpu.memory_space<vmem>>) attributes {dimension_semantics = [#tpu.dimension_semantics<parallel>, #tpu.dimension_semantics<parallel>, #tpu.dimension_semantics<arbitrary>], iteration_bounds = array<i64: 1, 1, 1>, scalar_prefetch = 0 : i64, scratch_operands = 0 : i64, tpu.core_type = #tpu.core_type<tc>, window_params = [{transform_indices = @transform_0, window_bounds = array<i64: 16, 128>}, {transform_indices = @transform_1, window_bounds = array<i64: 128, 128>}, {transform_indices = @transform_2, window_bounds = array<i64: 1, 128>}, {transform_indices = @transform_3, window_bounds = array<i64: 16, 128>}]} {
    %c0_i32 = arith.constant 0 : i32
    %0 = arith.cmpi eq, %arg2, %c0_i32 : i32
    %1 = arith.extui %0 : i1 to i32
    %c0_i32_0 = arith.constant 0 : i32
    %2 = arith.cmpi ne, %1, %c0_i32_0 : i32
    scf.if %2 {
      %c0_8 = arith.constant 0 : index
      %c0_9 = arith.constant 0 : index
      %9 = vector.load %arg5[%c0_8, %c0_9] : memref<1x128xf32, #tpu.memory_space<vmem>>, vector<1x128xf32>
      %10 = vector.shape_cast %9 : vector<1x128xf32> to vector<1x128xf32>
      %11 = vector.broadcast %10 : vector<1x128xf32> to vector<16x128xf32>
      %c0_10 = arith.constant 0 : index
      %c0_11 = arith.constant 0 : index
      %12 = vector.load %arg6[%c0_10, %c0_11] : memref<16x128xf32, #tpu.memory_space<vmem>>, vector<16x128xf32>
      tpu.vector_store %arg6[%c0_10, %c0_11], %11 {strides = array<i32>} : memref<16x128xf32, #tpu.memory_space<vmem>>, vector<16x128xf32>,
    } else {
    }
    %c0 = arith.constant 0 : index
    %c0_1 = arith.constant 0 : index
    %3 = vector.load %arg6[%c0, %c0_1] : memref<16x128xf32, #tpu.memory_space<vmem>>, vector<16x128xf32>
    %c0_2 = arith.constant 0 : index
    %c0_3 = arith.constant 0 : index
    %4 = vector.load %arg3[%c0_2, %c0_3] : memref<16x128xbf16, #tpu.memory_space<vmem>>, vector<16x128xbf16>
    %c0_4 = arith.constant 0 : index
    %c0_5 = arith.constant 0 : index
    %5 = vector.load %arg4[%c0_4, %c0_5] : memref<128x128xbf16, #tpu.memory_space<vmem>>, vector<128x128xbf16>
    %cst = arith.constant dense<0.000000e+00> : vector<16x128xf32>
    %6 = tpu.matmul %4, %5, %cst {dimension_numbers = #tpu.dot_dimension_numbers<[1], [0], [0], [1], [0, 0, 1, 1], [], []>} : vector<16x128xbf16>, vector<128x128xbf16>, vector<16x128xf32> -> vector<16x128xf32>
    %7 = arith.addf %3, %6 : vector<16x128xf32>
    %c0_6 = arith.constant 0 : index
    %c0_7 = arith.constant 0 : index
    %8 = vector.load %arg6[%c0_6, %c0_7] : memref<16x128xf32, #tpu.memory_space<vmem>>, vector<16x128xf32>
    tpu.vector_store %arg6[%c0_6, %c0_7], %7 {strides = array<i32>} : memref<16x128xf32, #tpu.memory_space<vmem>>, vector<16x128xf32>,
    return
  }
  func.func @transform_0(%arg0: i32, %arg1: i32, %arg2: i32) -> (i32, i32) {
    %c0_i32 = arith.constant 0 : i32
    return %arg0, %arg2 : i32, i32
  }
  func.func @transform_1(%arg0: i32, %arg1: i32, %arg2: i32) -> (i32, i32) {
    %c0_i32 = arith.constant 0 : i32
    return %arg2, %arg1 : i32, i32
  }
  func.func @transform_2(%arg0: i32, %arg1: i32, %arg2: i32) -> (i32, i32) {
    %c0_i32 = arith.constant 0 : i32
    %c0_i32_0 = arith.constant 0 : i32
    return %c0_i32, %arg1 : i32, i32
  }
  func.func @transform_3(%arg0: i32, %arg1: i32, %arg2: i32) -> (i32, i32) {
    %c0_i32 = arith.constant 0 : i32
    return %arg0, %arg1 : i32, i32
  }
}

</mosaic_0001>

<bundles_post_ra>
// kernel: tpu_custom_call.1
= control target key start
LH: loop header
LB: loop body
LE: loop exit
PB: predicated region body
PF: predicated region fallthrough
CT: control target
= control target key end

     0   :  { %8 = vsyncpa [#allocation3], 0  ;;  %s358_s0 = inlined_call_operand.hbm [shape: bf16[16,128], index: 0, kind: input, shape index: {}]   ;;  %s359_s1 = inlined_call_operand.hbm [shape: bf16[128,128], index: 1, kind: input, shape index: {}]   ;;  %s360_s2 = inlined_call_operand.vmem [shape: f32[1,128], index: 2, kind: input, shape index: {}]   ;;  %s361_s3 = inlined_call_operand.hbm [shape: f32[16,128], index: 3, kind: output, shape index: {}]  }
   0x1   :  { %9 = vsyncpa [#allocation6], 0 }
   0x2   :  { %10 = vsyncpa [#allocation4], 0  ;;  %s317_s12 = smov [#allocation2]  }
   0x3   :  { %s16_s13 = sshll.u32 %s317_s12, 4  ;;  %s17_s13 = int_to_ptr.vmem [resolvable:$true] %s16_s13 }
   0x4   :  { %s259_s14 = scalar_lea.vmem %s17_s13, 128  ;;  %p264_p1 = scmp.lt.s32.totalorder %s17_s13, %s17_s13 }
   0x5   :  { %p260_p0 = scmp.ne.s32.totalorder %s17_s13, %s259_s14  ;;  %p265_p2 = scmp.lt.s32.totalorder %s259_s14, %s259_s14 }
   0x7   :  { %p266_p3 = por %p265_p2, %p264_p1 }
   0x9   :  { %p267_p4 = pnand %p266_p3, %p260_p0 }
   0xb   :  { %270 = shalt.err (!%p267_p4)
}
   0xc   :  { %s318_s15 = smov 64   ;;  %s319_s16 = smov 4  }
   0xd   :  { %22 = dma.hbm_to_vmem [thread:$0]  %s358_s0, 128, %s17_s13, [#allocation3], %s318_s15, %s318_s15, %s319_s16  }
   0xe   :  { %s320_s19 = smov [#allocation5]  }
   0xf   :  { %s28_s20 = sshll.u32 %s320_s19, 4  ;;  %s29_s20 = int_to_ptr.vmem [resolvable:$true] %s28_s20 }
  0x10   :  { %s279_s21 = scalar_lea.vmem %s29_s20, 1024  ;;  %p284_p6 = scmp.lt.s32.totalorder %s29_s20, %s29_s20 }
  0x11   :  { %p280_p5 = scmp.ne.s32.totalorder %s29_s20, %s279_s21  ;;  %p285_p7 = scmp.lt.s32.totalorder %s279_s21, %s279_s21 }
  0x13   :  { %p286_p8 = por %p285_p7, %p284_p6 }
  0x15   :  { %p287_p9 = pnand %p286_p8, %p280_p5 }
  0x17   :  { %290 = shalt.err (!%p287_p9)
}
  0x18   :  { %34 = dma.hbm_to_vmem [thread:$0]  %s359_s1, 1024, %s29_s20, [#allocation6], %s318_s15, %s318_s15, %s319_s16  }
  0x19   :  { %311 = dma.done.wait [#allocation3], 128  }
  0x1a   :  { %312 = vsyncadd [#allocation3], 4294967168 }
  0x1b   :  { %313 = dma.done.wait [#allocation6], 1024  }
  0x1c   :  { %314 = vsyncadd [#allocation6], 4294966272  ;;  %v321_v0 = vmov 0.0   ;;  %vm322_vm0 = vmmov 0   ;;  %v242_v1 = vld [vmem:[#allocation5 + $0x38] sm:$0xff]   ;;  %v243_v2 = vld [vmem:[#allocation5 + $0x30] sm:$0xff]  }
  0x1d   :  { %213 = vmatprep.subr.bf16.mxu0 %v321_v0  ;;  %229 = vmatprep.mubr.msk.bf16.mxu0 %vm322_vm0, %v321_v0  ;;  %v244_v3 = vld [vmem:[#allocation5 + $0x28] sm:$0xff]   ;;  %v245_v4 = vld [vmem:[#allocation5 + $0x20] sm:$0xff]   ;;  %v246_v5 = vld [vmem:[#allocation5 + $0x18] sm:$0xff]   ;;  %s323_s24 = smov [#allocation7]  }
  0x1e   :  { %214 = vmatpush3.bf16.msra.mxu0 %v242_v1  ;;  %v247_v6 = vld [vmem:[#allocation5 + $0x10] sm:$0xff]   ;;  %v248_v7 = vld [vmem:[#allocation5 + $0x8] sm:$0xff]   ;;  %v249_v8 = vld [vmem:[#allocation5] sm:$0xff]   ;;  %s181_s25 = sshll.u32 %s323_s24, 4  ;;  %s182_s25 = int_to_ptr.vmem [resolvable:$true] %s181_s25 }
  0x1f   :  { %215 = vmatprep.subr.bf16.mxu0 %v321_v0  ;;  %v250_v9 = vld [vmem:[#allocation2] sm:$0xff]   ;;  %s291_s26 = scalar_lea.vmem %s182_s25, 256  ;;  %p296_p11 = scmp.lt.s32.totalorder %s182_s25, %s182_s25 }
  0x20   :  { %v194_v10 = vld [vmem:[%s360_s2] ss:$0 sm:$0xff]  ;;  %p292_p10 = scmp.ne.s32.totalorder %s182_s25, %s291_s26  ;;  %p297_p12 = scmp.lt.s32.totalorder %s291_s26, %s291_s26 }
  0x22   :  { %216 = vmatpush3.bf16.msra.mxu0 %v243_v2  ;;  %p298_p13 = por %p297_p12, %p296_p11 }
  0x23   :  { %217 = vmatprep.subr.bf16.mxu0 %v321_v0 }
  0x24   :  { %p299_p0 = pnand %p298_p13, %p292_p10 }
  0x26   :  { %218 = vmatpush3.bf16.msra.mxu0 %v244_v3 }
  0x27   :  { %219 = vmatprep.subr.bf16.mxu0 %v321_v0 }
  0x2a   :  { %220 = vmatpush3.bf16.msra.mxu0 %v245_v4 }
  0x2b   :  { %221 = vmatprep.subr.bf16.mxu0 %v321_v0 }
  0x2e   :  { %222 = vmatpush3.bf16.msra.mxu0 %v246_v5 }
  0x2f   :  { %223 = vmatprep.subr.bf16.mxu0 %v321_v0 }
  0x32   :  { %224 = vmatpush3.bf16.msra.mxu0 %v247_v6 }
  0x33   :  { %225 = vmatprep.subr.bf16.mxu0 %v321_v0 }
  0x36   :  { %226 = vmatpush3.bf16.msra.mxu0 %v248_v7 }
  0x37   :  { %227 = vmatprep.subr.bf16.mxu0 %v321_v0 }
  0x3a   :  { %228 = vmatpush3.bf16.msra.mxu0 %v249_v8 }
  0x3d   :  { %230 = vmatmul.mubr.bf16.vlgmr.msra.gmra.mxu0 %v250_v9 }
  0xfd   :  { %v165_v11 = vpop.f32.mrf.mxu0 }
  0xfe   :  { %v172_v12 = vadd.f32 %v194_v10, %v165_v11 }
  0xff   :  { %v231_v13 = vpop.f32.mrf.mxu0 }
 0x100   :  { %174 = vst [vmem:[#allocation7] sm:$0xff] %v172_v12 }
 0x101   :  { %v168_v14 = vpop.f32.mrf.mxu0 }
 0x102   :  { %v173_v15 = vadd.f32 %v194_v10, %v168_v14 }
 0x103   :  { %v232_v16 = vpop.f32.mrf.mxu0 }
 0x104   :  { %175 = vst [vmem:[#allocation7 + $0x8] sm:$0xff] %v173_v15 }
 0x105   :  { %302 = shalt.err (!%p299_p0)
}
 0x106   :  { %s324_s27 = smov 128   ;;  %s325_s2 = smov 8  }
 0x107   :  { %187 = dma.vmem_to_hbm [thread:$0]  %s182_s25, 256, %s361_s3, [#allocation4], %s324_s27, %s324_s27, %s325_s2  }
 0x108   :  { %315 = dma.done.wait [#allocation4], 256  }
 0x109   :  { %316 = vsyncadd [#allocation4], 4294967040 }
 0x10a   :  { %191 = vsyncpa [#allocation3], 1 }
 0x10b   :  { %192 = vsyncpa [#allocation6], 1 }
 0x10c   :  { %193 = vsyncpa [#allocation4], 1 }

</bundles_post_ra>
